<compile_context>
chip_gen: v7x
topology: tpu7x:2x2x1
jax: 0.10.0
libtpu: 0.0.40
codegen_flags: <defaults>
</compile_context>

<pallas_src>
import functools

import jax
import jax.numpy as jnp
from jax.experimental import pallas as pl
from jax.experimental.pallas import tpu as pltpu

PRIMITIVES_DOWN = ["avg_pool_3x3", "max_pool_3x3", "down_conv_3x3", "down_conv_1x1"]
NUM_OPS = len(PRIMITIVES_DOWN)

_NEG = -1e30  # stands in for -inf so masked max-pool taps can never win


# --------------------------- Pallas kernel ---------------------------------
def _mixed_down_kernel(s_ref, ev_ref, od_ref, wmat_ref, aux_ref, o_ref, *, Wo, TPP_pad):
    # s_ref:    (NUM_OPS,) f32 SMEM -- arch weights (only w_max = s[1] is read here;
    #           the avg weight is folded into aux, the conv weights into wmat).
    # ev_ref:   (1, 1, 3, C, TPP_pad + Wo) -- even-output-row taps, per column tap dj
    # od_ref:   (1, 1, 3, C, TPP_pad)      -- odd-output-row taps (kernel row di = 1)
    # wmat_ref: (3, 3, C, C)  -- pre-scaled conv weights [di, dj, co, ci]
    #                            (w2*conv3x3, with w3*conv1x1 fused into [1, 1])
    # aux_ref:  (1, 3, TPP_pad) -- [w_avg / valid_count, row-0 penalty, col-0 penalty]
    # o_ref:    (1, 1, C, TPP_pad)
    w_max = s_ref[1]
    avg_scale = aux_ref[0, 0:1, :]   # (1, TPP_pad) = w_avg / count (count_include_pad=False)
    row_pen = aux_ref[0, 1:2, :]     # -1e30 where the di=0 tap hits the top zero-pad row
    col_pen = aux_ref[0, 2:3, :]     # -1e30 where the dj=0 tap hits the left zero-pad col

    acc = None    # fused conv accumulator   (C, TPP_pad)
    ssum = None   # avg-pool tap sum         (C, TPP_pad)
    mxv = None    # max-pool running maximum (C, TPP_pad)
    for dj in range(3):
        ev = ev_ref[0, 0, dj]                       # (C, TPP_pad + Wo)
        taps = (
            ev[:, 0:TPP_pad],                       # di = 0  (padded rows 2*ho)
            od_ref[0, 0, dj],                       # di = 1  (padded rows 2*ho + 1)
            ev[:, Wo:Wo + TPP_pad],                 # di = 2  (padded rows 2*ho + 2, halo shift)
        )
        for di in range(3):
            t = taps[di]
            # fused (pre-scaled) 3x3 + 1x1 conv -> MXU
            d = jnp.dot(wmat_ref[di, dj], t, preferred_element_type=jnp.float32)
            acc = d if acc is None else acc + d
            # avg pool: zero-padded taps add 0; divisor handled via avg_scale
            ssum = t if ssum is None else ssum + t
            # max pool: additive penalties push padded taps to -1e30
            m = t
            if di == 0:
                m = m + row_pen
            if dj == 0:
                m = m + col_pen
            mxv = m if mxv is None else jnp.maximum(mxv, m)

    o_ref[0, 0] = acc + w_max * mxv + ssum * avg_scale


# --------------------------- glue (plain JAX) -------------------------------
def _choose_rows_per_tile(Ho, Wo, C, vmem_budget_bytes=4 * 1024 * 1024):
    """Largest divisor of Ho whose f32 input tile (3 ev + 3 od planes) fits the budget."""
    best = 1
    for tho in range(1, Ho + 1):
        if Ho % tho:
            continue
        if 6 * C * tho * Wo * 4 <= vmem_budget_bytes:
            best = tho
    return best


def mixed_op_down(x, weights, w3, w1):
    """x: (N,C,H,W); weights: (NUM_OPS,); w3: (C,C,3,3); w1: (C,C,1,1) -> (N,C,H//2,W//2)."""
    N, C, H, W = x.shape
    assert H % 2 == 0 and W % 2 == 0, "stride-2 downsample expects even H, W"
    Ho, Wo = H // 2, W // 2
    THo = _choose_rows_per_tile(Ho, Wo, C)
    nT = Ho // THo
    TPP = THo * Wo                                    # output pixels per tile
    TPP_pad = ((TPP + 127) // 128) * 128              # lane-dense output tile
    LE = (THo + 1) * Wo                               # even-row plane tile (1-row halo)
    LE_pad = TPP_pad + Wo

    xf = x.astype(jnp.float32)
    w_ops = weights.astype(jnp.float32)
    w3f = w3.astype(jnp.float32)
    w1f = w1.astype(jnp.float32).reshape(C, C)

    # ---- single cheap repack into stride-2 phase planes (no 9x im2col in HBM) ----
    # one zero row on top / one zero col on the left; bottom/right pad is never read.
    xp = jnp.pad(xf, ((0, 0), (0, 0), (1, 0), (1, 0)))             # (N, C, H+1, W+1)
    z = [xp[:, :, :, dj::2][:, :, :, :Wo] for dj in range(3)]       # column taps dj=0..2
    ZE = jnp.stack([zz[:, :, 0::2, :] for zz in z], axis=1)         # (N, 3, C, Ho+1, Wo)
    ZO = jnp.stack([zz[:, :, 1::2, :] for zz in z], axis=1)         # (N, 3, C, Ho,   Wo)

    # per-tile blocks; the even-row planes carry a 1-row halo for the di=2 taps
    ev = jnp.stack([ZE[:, :, :, j * THo: j * THo + THo + 1, :] for j in range(nT)], axis=1)
    od = jnp.stack([ZO[:, :, :, j * THo: (j + 1) * THo, :] for j in range(nT)], axis=1)
    ev = ev.reshape(N, nT, 3, C, LE)
    od = od.reshape(N, nT, 3, C, TPP)
    ev = jnp.pad(ev, ((0, 0), (0, 0), (0, 0), (0, 0), (0, LE_pad - LE)))
    od = jnp.pad(od, ((0, 0), (0, 0), (0, 0), (0, 0), (0, TPP_pad - TPP)))

    # ---- fused, pre-scaled conv weights: w2*conv3x3 (+ w3*conv1x1 on the center tap) ----
    wmat = jnp.transpose(w3f, (2, 3, 0, 1)) * w_ops[2]              # (di, dj, co, ci)
    wmat = wmat.at[1, 1].add(w_ops[3] * w1f)

    # ---- per-pixel aux: avg divisor (count_include_pad=False) + max-pool pad penalties ----
    row0 = (jnp.arange(Ho) == 0).astype(jnp.float32)
    col0 = (jnp.arange(Wo) == 0).astype(jnp.float32)
    count = (3.0 - row0)[:, None] * (3.0 - col0)[None, :]           # (Ho, Wo) in {4, 6, 9}
    avg_scale = w_ops[0] / count
    row_pen = jnp.broadcast_to((_NEG * row0)[:, None], (Ho, Wo))
    col_pen = jnp.broadcast_to((_NEG * col0)[None, :], (Ho, Wo))
    aux = jnp.stack([avg_scale, row_pen, col_pen], axis=0)          # (3, Ho, Wo)
    aux = aux.reshape(3, nT, TPP).transpose(1, 0, 2)                # (nT, 3, TPP)
    aux = jnp.pad(aux, ((0, 0), (0, 0), (0, TPP_pad - TPP)))

    kernel = functools.partial(_mixed_down_kernel, Wo=Wo, TPP_pad=TPP_pad)
    out = pl.pallas_call(
        kernel,
        out_shape=jax.ShapeDtypeStruct((N, nT, C, TPP_pad), jnp.float32),
        grid_spec=pltpu.PrefetchScalarGridSpec(
            num_scalar_prefetch=1,                      # arch weights land in SMEM
            grid=(N, nT),
            in_specs=[
                pl.BlockSpec((1, 1, 3, C, LE_pad), lambda n, j, s: (n, j, 0, 0, 0)),
                pl.BlockSpec((1, 1, 3, C, TPP_pad), lambda n, j, s: (n, j, 0, 0, 0)),
                pl.BlockSpec((3, 3, C, C), lambda n, j, s: (0, 0, 0, 0)),
                pl.BlockSpec((1, 3, TPP_pad), lambda n, j, s: (j, 0, 0)),
            ],
            out_specs=pl.BlockSpec((1, 1, C, TPP_pad), lambda n, j, s: (n, j, 0, 0)),
        ),
        compiler_params=pltpu.CompilerParams(
            dimension_semantics=("parallel", "parallel"),
            vmem_limit_bytes=32 * 1024 * 1024,
        ),
    )(w_ops, ev, od, wmat, aux)

    out = out[:, :, :, :TPP].reshape(N, nT, C, THo, Wo)
    out = jnp.transpose(out, (0, 2, 1, 3, 4)).reshape(N, C, Ho, Wo)
    return out


# --------------------------- pure-JAX reference -----------------------------
def _reference(x, weights, w3, w1):
    pool_pad = ((0, 0), (0, 0), (1, 1), (1, 1))
    win = (1, 1, 3, 3)
    strd = (1, 1, 2, 2)
    s = jax.lax.reduce_window(x, 0.0, jax.lax.add, win, strd, pool_pad)
    cnt = jax.lax.reduce_window(jnp.ones_like(x), 0.0, jax.lax.add, win, strd, pool_pad)
    avg = s / cnt                                        # count_include_pad=False
    mx = jax.lax.reduce_window(x, -jnp.inf, jax.lax.max, win, strd, pool_pad)
    dn = ("NCHW", "OIHW", "NCHW")
    c3 = jax.lax.conv_general_dilated(x, w3, (2, 2), ((1, 1), (1, 1)), dimension_numbers=dn)
    c1 = jax.lax.conv_general_dilated(x, w1, (2, 2), ((0, 0), (0, 0)), dimension_numbers=dn)
    return weights[0] * avg + weights[1] * mx + weights[2] * c3 + weights[3] * c1


if __name__ == "__main__":
    N, C, H, W = 2, 4, 16, 16
    key = jax.random.PRNGKey(0)
    kx, k3, k1, ka = jax.random.split(key, 4)
    x = jax.random.normal(kx, (N, C, H, W), dtype=jnp.float32)
    w3 = 0.1 * jax.random.normal(k3, (C, C, 3, 3), dtype=jnp.float32)
    w1 = 0.1 * jax.random.normal(k1, (C, C, 1, 1), dtype=jnp.float32)
    alphas = jax.random.normal(ka, (NUM_OPS,), dtype=jnp.float32)
    weights = jax.nn.softmax(alphas)

    out = jax.jit(mixed_op_down)(x, weights, w3, w1)
    out = jax.block_until_ready(out)

    ref = _reference(x, weights, w3, w1)
    assert out.shape == (N, C, H // 2, W // 2), out.shape
    err = float(jnp.max(jnp.abs(out - ref)))
    assert jnp.allclose(out, ref, atol=2e-5, rtol=2e-5), err
    print("KERNEL_OK")
</pallas_src>

<mosaic_0001>
module attributes {stable_mosaic.version = 11 : i64} {
  func.func @_mixed_down_kernel(%arg0: i32, %arg1: i32, %arg2: memref<4xf32, #tpu.memory_space<smem>>, %arg3: memref<1x1x3x4x136xf32, #tpu.memory_space<vmem>>, %arg4: memref<1x1x3x4x128xf32, #tpu.memory_space<vmem>>, %arg5: memref<3x3x4x4xf32, #tpu.memory_space<vmem>>, %arg6: memref<1x3x128xf32, #tpu.memory_space<vmem>>, %arg7: memref<1x1x4x128xf32, #tpu.memory_space<vmem>>) attributes {dimension_semantics = [#tpu.dimension_semantics<parallel>, #tpu.dimension_semantics<parallel>], iteration_bounds = array<i64: 2, 1>, scalar_prefetch = 1 : i64, scratch_operands = 0 : i64, tpu.core_type = #tpu.core_type<tc>, window_params = [{transform_indices = @transform_0, window_bounds = array<i64: 1, 1, 3, 4, 136>}, {transform_indices = @transform_1, window_bounds = array<i64: 1, 1, 3, 4, 128>}, {pipeline_mode = #tpu.pipeline_mode<synchronous>, transform_indices = @transform_2, window_bounds = array<i64: 3, 3, 4, 4>}, {transform_indices = @transform_3, window_bounds = array<i64: 1, 3, 128>}, {transform_indices = @transform_4, window_bounds = array<i64: 1, 1, 4, 128>}]} {
    %c1 = arith.constant 1 : index
    %0 = memref.load %arg2[%c1] : memref<4xf32, #tpu.memory_space<smem>>
    %c0 = arith.constant 0 : index
    %c0_0 = arith.constant 0 : index
    %c0_1 = arith.constant 0 : index
    %1 = vector.load %arg6[%c0, %c0_0, %c0_1] : memref<1x3x128xf32, #tpu.memory_space<vmem>>, vector<1x1x128xf32>
    %2 = vector.shape_cast %1 : vector<1x1x128xf32> to vector<1x128xf32>
    %c0_2 = arith.constant 0 : index
    %c1_3 = arith.constant 1 : index
    %c0_4 = arith.constant 0 : index
    %3 = vector.load %arg6[%c0_2, %c1_3, %c0_4] : memref<1x3x128xf32, #tpu.memory_space<vmem>>, vector<1x1x128xf32>
    %4 = vector.shape_cast %3 : vector<1x1x128xf32> to vector<1x128xf32>
    %c0_5 = arith.constant 0 : index
    %c2 = arith.constant 2 : index
    %c0_6 = arith.constant 0 : index
    %5 = vector.load %arg6[%c0_5, %c2, %c0_6] : memref<1x3x128xf32, #tpu.memory_space<vmem>>, vector<1x1x128xf32>
    %6 = vector.shape_cast %5 : vector<1x1x128xf32> to vector<1x128xf32>
    %c0_7 = arith.constant 0 : index
    %c0_8 = arith.constant 0 : index
    %c0_9 = arith.constant 0 : index
    %c0_10 = arith.constant 0 : index
    %c0_11 = arith.constant 0 : index
    %7 = vector.load %arg3[%c0_7, %c0_8, %c0_9, %c0_10, %c0_11] : memref<1x1x3x4x136xf32, #tpu.memory_space<vmem>>, vector<1x1x1x4x136xf32>
    %8 = vector.shape_cast %7 : vector<1x1x1x4x136xf32> to vector<4x136xf32>
    %9 = vector.extract_strided_slice %8 {offsets = [0, 0], sizes = [4, 128], strides = [1, 1]} : vector<4x136xf32> to vector<4x128xf32>
    %c0_12 = arith.constant 0 : index
    %c0_13 = arith.constant 0 : index
    %c0_14 = arith.constant 0 : index
    %c0_15 = arith.constant 0 : index
    %c0_16 = arith.constant 0 : index
    %10 = vector.load %arg4[%c0_12, %c0_13, %c0_14, %c0_15, %c0_16] : memref<1x1x3x4x128xf32, #tpu.memory_space<vmem>>, vector<1x1x1x4x128xf32>
    %11 = vector.shape_cast %10 : vector<1x1x1x4x128xf32> to vector<4x128xf32>
    %12 = vector.extract_strided_slice %8 {offsets = [0, 8], sizes = [4, 128], strides = [1, 1]} : vector<4x136xf32> to vector<4x128xf32>
    %c0_17 = arith.constant 0 : index
    %c0_18 = arith.constant 0 : index
    %c0_19 = arith.constant 0 : index
    %c0_20 = arith.constant 0 : index
    %13 = vector.load %arg5[%c0_17, %c0_18, %c0_19, %c0_20] : memref<3x3x4x4xf32, #tpu.memory_space<vmem>>, vector<1x1x4x4xf32>
    %14 = vector.shape_cast %13 : vector<1x1x4x4xf32> to vector<4x4xf32>
    %cst = arith.constant dense<0.000000e+00> : vector<4x128xf32>
    %15 = tpu.matmul %14, %9, %cst {dimension_numbers = #tpu.dot_dimension_numbers<[1], [0], [0], [1], [0, 0, 1, 1], [], []>} : vector<4x4xf32>, vector<4x128xf32>, vector<4x128xf32> -> vector<4x128xf32>
    %16 = vector.broadcast %4 : vector<1x128xf32> to vector<4x128xf32>
    %17 = arith.addf %9, %16 : vector<4x128xf32>
    %18 = vector.broadcast %6 : vector<1x128xf32> to vector<4x128xf32>
    %19 = arith.addf %17, %18 : vector<4x128xf32>
    %c1_21 = arith.constant 1 : index
    %c0_22 = arith.constant 0 : index
    %c0_23 = arith.constant 0 : index
    %c0_24 = arith.constant 0 : index
    %20 = vector.load %arg5[%c1_21, %c0_22, %c0_23, %c0_24] : memref<3x3x4x4xf32, #tpu.memory_space<vmem>>, vector<1x1x4x4xf32>
    %21 = vector.shape_cast %20 : vector<1x1x4x4xf32> to vector<4x4xf32>
    %cst_25 = arith.constant dense<0.000000e+00> : vector<4x128xf32>
    %22 = tpu.matmul %21, %11, %cst_25 {dimension_numbers = #tpu.dot_dimension_numbers<[1], [0], [0], [1], [0, 0, 1, 1], [], []>} : vector<4x4xf32>, vector<4x128xf32>, vector<4x128xf32> -> vector<4x128xf32>
    %23 = arith.addf %15, %22 : vector<4x128xf32>
    %24 = arith.addf %9, %11 : vector<4x128xf32>
    %25 = vector.broadcast %6 : vector<1x128xf32> to vector<4x128xf32>
    %26 = arith.addf %11, %25 : vector<4x128xf32>
    %27 = arith.maximumf %19, %26 : vector<4x128xf32>
    %c2_26 = arith.constant 2 : index
    %c0_27 = arith.constant 0 : index
    %c0_28 = arith.constant 0 : index
    %c0_29 = arith.constant 0 : index
    %28 = vector.load %arg5[%c2_26, %c0_27, %c0_28, %c0_29] : memref<3x3x4x4xf32, #tpu.memory_space<vmem>>, vector<1x1x4x4xf32>
    %29 = vector.shape_cast %28 : vector<1x1x4x4xf32> to vector<4x4xf32>
    %cst_30 = arith.constant dense<0.000000e+00> : vector<4x128xf32>
    %30 = tpu.matmul %29, %12, %cst_30 {dimension_numbers = #tpu.dot_dimension_numbers<[1], [0], [0], [1], [0, 0, 1, 1], [], []>} : vector<4x4xf32>, vector<4x128xf32>, vector<4x128xf32> -> vector<4x128xf32>
    %31 = arith.addf %23, %30 : vector<4x128xf32>
    %32 = arith.addf %24, %12 : vector<4x128xf32>
    %33 = vector.broadcast %6 : vector<1x128xf32> to vector<4x128xf32>
    %34 = arith.addf %12, %33 : vector<4x128xf32>
    %35 = arith.maximumf %27, %34 : vector<4x128xf32>
    %c0_31 = arith.constant 0 : index
    %c0_32 = arith.constant 0 : index
    %c1_33 = arith.constant 1 : index
    %c0_34 = arith.constant 0 : index
    %c0_35 = arith.constant 0 : index
    %36 = vector.load %arg3[%c0_31, %c0_32, %c1_33, %c0_34, %c0_35] : memref<1x1x3x4x136xf32, #tpu.memory_space<vmem>>, vector<1x1x1x4x136xf32>
    %37 = vector.shape_cast %36 : vector<1x1x1x4x136xf32> to vector<4x136xf32>
    %38 = vector.extract_strided_slice %37 {offsets = [0, 0], sizes = [4, 128], strides = [1, 1]} : vector<4x136xf32> to vector<4x128xf32>
    %c0_36 = arith.constant 0 : index
    %c0_37 = arith.constant 0 : index
    %c1_38 = arith.constant 1 : index
    %c0_39 = arith.constant 0 : index
    %c0_40 = arith.constant 0 : index
    %39 = vector.load %arg4[%c0_36, %c0_37, %c1_38, %c0_39, %c0_40] : memref<1x1x3x4x128xf32, #tpu.memory_space<vmem>>, vector<1x1x1x4x128xf32>
    %40 = vector.shape_cast %39 : vector<1x1x1x4x128xf32> to vector<4x128xf32>
    %41 = vector.extract_strided_slice %37 {offsets = [0, 8], sizes = [4, 128], strides = [1, 1]} : vector<4x136xf32> to vector<4x128xf32>
    %c0_41 = arith.constant 0 : index
    %c1_42 = arith.constant 1 : index
    %c0_43 = arith.constant 0 : index
    %c0_44 = arith.constant 0 : index
    %42 = vector.load %arg5[%c0_41, %c1_42, %c0_43, %c0_44] : memref<3x3x4x4xf32, #tpu.memory_space<vmem>>, vector<1x1x4x4xf32>
    %43 = vector.shape_cast %42 : vector<1x1x4x4xf32> to vector<4x4xf32>
    %cst_45 = arith.constant dense<0.000000e+00> : vector<4x128xf32>
    %44 = tpu.matmul %43, %38, %cst_45 {dimension_numbers = #tpu.dot_dimension_numbers<[1], [0], [0], [1], [0, 0, 1, 1], [], []>} : vector<4x4xf32>, vector<4x128xf32>, vector<4x128xf32> -> vector<4x128xf32>
    %45 = arith.addf %31, %44 : vector<4x128xf32>
    %46 = arith.addf %32, %38 : vector<4x128xf32>
    %47 = vector.broadcast %4 : vector<1x128xf32> to vector<4x128xf32>
    %48 = arith.addf %38, %47 : vector<4x128xf32>
    %49 = arith.maximumf %35, %48 : vector<4x128xf32>
    %c1_46 = arith.constant 1 : index
    %c1_47 = arith.constant 1 : index
    %c0_48 = arith.constant 0 : index
    %c0_49 = arith.constant 0 : index
    %50 = vector.load %arg5[%c1_46, %c1_47, %c0_48, %c0_49] : memref<3x3x4x4xf32, #tpu.memory_space<vmem>>, vector<1x1x4x4xf32>
    %51 = vector.shape_cast %50 : vector<1x1x4x4xf32> to vector<4x4xf32>
    %cst_50 = arith.constant dense<0.000000e+00> : vector<4x128xf32>
    %52 = tpu.matmul %51, %40, %cst_50 {dimension_numbers = #tpu.dot_dimension_numbers<[1], [0], [0], [1], [0, 0, 1, 1], [], []>} : vector<4x4xf32>, vector<4x128xf32>, vector<4x128xf32> -> vector<4x128xf32>
    %53 = arith.addf %45, %52 : vector<4x128xf32>
    %54 = arith.addf %46, %40 : vector<4x128xf32>
    %55 = arith.maximumf %49, %40 : vector<4x128xf32>
    %c2_51 = arith.constant 2 : index
    %c1_52 = arith.constant 1 : index
    %c0_53 = arith.constant 0 : index
    %c0_54 = arith.constant 0 : index
    %56 = vector.load %arg5[%c2_51, %c1_52, %c0_53, %c0_54] : memref<3x3x4x4xf32, #tpu.memory_space<vmem>>, vector<1x1x4x4xf32>
    %57 = vector.shape_cast %56 : vector<1x1x4x4xf32> to vector<4x4xf32>
    %cst_55 = arith.constant dense<0.000000e+00> : vector<4x128xf32>
    %58 = tpu.matmul %57, %41, %cst_55 {dimension_numbers = #tpu.dot_dimension_numbers<[1], [0], [0], [1], [0, 0, 1, 1], [], []>} : vector<4x4xf32>, vector<4x128xf32>, vector<4x128xf32> -> vector<4x128xf32>
    %59 = arith.addf %53, %58 : vector<4x128xf32>
    %60 = arith.addf %54, %41 : vector<4x128xf32>
    %61 = arith.maximumf %55, %41 : vector<4x128xf32>
    %c0_56 = arith.constant 0 : index
    %c0_57 = arith.constant 0 : index
    %c2_58 = arith.constant 2 : index
    %c0_59 = arith.constant 0 : index
    %c0_60 = arith.constant 0 : index
    %62 = vector.load %arg3[%c0_56, %c0_57, %c2_58, %c0_59, %c0_60] : memref<1x1x3x4x136xf32, #tpu.memory_space<vmem>>, vector<1x1x1x4x136xf32>
    %63 = vector.shape_cast %62 : vector<1x1x1x4x136xf32> to vector<4x136xf32>
    %64 = vector.extract_strided_slice %63 {offsets = [0, 0], sizes = [4, 128], strides = [1, 1]} : vector<4x136xf32> to vector<4x128xf32>
    %c0_61 = arith.constant 0 : index
    %c0_62 = arith.constant 0 : index
    %c2_63 = arith.constant 2 : index
    %c0_64 = arith.constant 0 : index
    %c0_65 = arith.constant 0 : index
    %65 = vector.load %arg4[%c0_61, %c0_62, %c2_63, %c0_64, %c0_65] : memref<1x1x3x4x128xf32, #tpu.memory_space<vmem>>, vector<1x1x1x4x128xf32>
    %66 = vector.shape_cast %65 : vector<1x1x1x4x128xf32> to vector<4x128xf32>
    %67 = vector.extract_strided_slice %63 {offsets = [0, 8], sizes = [4, 128], strides = [1, 1]} : vector<4x136xf32> to vector<4x128xf32>
    %c0_66 = arith.constant 0 : index
    %c2_67 = arith.constant 2 : index
    %c0_68 = arith.constant 0 : index
    %c0_69 = arith.constant 0 : index
    %68 = vector.load %arg5[%c0_66, %c2_67, %c0_68, %c0_69] : memref<3x3x4x4xf32, #tpu.memory_space<vmem>>, vector<1x1x4x4xf32>
    %69 = vector.shape_cast %68 : vector<1x1x4x4xf32> to vector<4x4xf32>
    %cst_70 = arith.constant dense<0.000000e+00> : vector<4x128xf32>
    %70 = tpu.matmul %69, %64, %cst_70 {dimension_numbers = #tpu.dot_dimension_numbers<[1], [0], [0], [1], [0, 0, 1, 1], [], []>} : vector<4x4xf32>, vector<4x128xf32>, vector<4x128xf32> -> vector<4x128xf32>
    %71 = arith.addf %59, %70 : vector<4x128xf32>
    %72 = arith.addf %60, %64 : vector<4x128xf32>
    %73 = vector.broadcast %4 : vector<1x128xf32> to vector<4x128xf32>
    %74 = arith.addf %64, %73 : vector<4x128xf32>
    %75 = arith.maximumf %61, %74 : vector<4x128xf32>
    %c1_71 = arith.constant 1 : index
    %c2_72 = arith.constant 2 : index
    %c0_73 = arith.constant 0 : index
    %c0_74 = arith.constant 0 : index
    %76 = vector.load %arg5[%c1_71, %c2_72, %c0_73, %c0_74] : memref<3x3x4x4xf32, #tpu.memory_space<vmem>>, vector<1x1x4x4xf32>
    %77 = vector.shape_cast %76 : vector<1x1x4x4xf32> to vector<4x4xf32>
    %cst_75 = arith.constant dense<0.000000e+00> : vector<4x128xf32>
    %78 = tpu.matmul %77, %66, %cst_75 {dimension_numbers = #tpu.dot_dimension_numbers<[1], [0], [0], [1], [0, 0, 1, 1], [], []>} : vector<4x4xf32>, vector<4x128xf32>, vector<4x128xf32> -> vector<4x128xf32>
    %79 = arith.addf %71, %78 : vector<4x128xf32>
    %80 = arith.addf %72, %66 : vector<4x128xf32>
    %81 = arith.maximumf %75, %66 : vector<4x128xf32>
    %c2_76 = arith.constant 2 : index
    %c2_77 = arith.constant 2 : index
    %c0_78 = arith.constant 0 : index
    %c0_79 = arith.constant 0 : index
    %82 = vector.load %arg5[%c2_76, %c2_77, %c0_78, %c0_79] : memref<3x3x4x4xf32, #tpu.memory_space<vmem>>, vector<1x1x4x4xf32>
    %83 = vector.shape_cast %82 : vector<1x1x4x4xf32> to vector<4x4xf32>
    %cst_80 = arith.constant dense<0.000000e+00> : vector<4x128xf32>
    %84 = tpu.matmul %83, %67, %cst_80 {dimension_numbers = #tpu.dot_dimension_numbers<[1], [0], [0], [1], [0, 0, 1, 1], [], []>} : vector<4x4xf32>, vector<4x128xf32>, vector<4x128xf32> -> vector<4x128xf32>
    %85 = arith.addf %79, %84 : vector<4x128xf32>
    %86 = arith.addf %80, %67 : vector<4x128xf32>
    %87 = arith.maximumf %81, %67 : vector<4x128xf32>
    %88 = vector.broadcast %0 : f32 to vector<4x128xf32>
    %89 = arith.mulf %88, %87 : vector<4x128xf32>
    %90 = arith.addf %85, %89 : vector<4x128xf32>
    %91 = vector.broadcast %2 : vector<1x128xf32> to vector<4x128xf32>
    %92 = arith.mulf %86, %91 : vector<4x128xf32>
    %93 = arith.addf %90, %92 : vector<4x128xf32>
    %c0_81 = arith.constant 0 : index
    %c0_82 = arith.constant 0 : index
    %c0_83 = arith.constant 0 : index
    %c0_84 = arith.constant 0 : index
    %94 = vector.load %arg7[%c0_81, %c0_82, %c0_83, %c0_84] : memref<1x1x4x128xf32, #tpu.memory_space<vmem>>, vector<1x1x4x128xf32>
    %95 = vector.shape_cast %94 : vector<1x1x4x128xf32> to vector<4x128xf32>
    %96 = vector.shape_cast %93 : vector<4x128xf32> to vector<1x1x4x128xf32>
    tpu.vector_store %arg7[%c0_81, %c0_82, %c0_83, %c0_84], %96 {strides = array<i32>} : memref<1x1x4x128xf32, #tpu.memory_space<vmem>>, vector<1x1x4x128xf32>,
    return
  }
  func.func @transform_0(%arg0: i32, %arg1: i32, %arg2: memref<4xf32, #tpu.memory_space<smem>>) -> (i32, i32, i32, i32, i32) {
    %c0_i32 = arith.constant 0 : i32
    %c0_i32_0 = arith.constant 0 : i32
    %c0_i32_1 = arith.constant 0 : i32
    %c0_i32_2 = arith.constant 0 : i32
    return %arg0, %arg1, %c0_i32, %c0_i32_0, %c0_i32_1 : i32, i32, i32, i32, i32
  }
  func.func @transform_1(%arg0: i32, %arg1: i32, %arg2: memref<4xf32, #tpu.memory_space<smem>>) -> (i32, i32, i32, i32, i32) {
    %c0_i32 = arith.constant 0 : i32
    %c0_i32_0 = arith.constant 0 : i32
    %c0_i32_1 = arith.constant 0 : i32
    %c0_i32_2 = arith.constant 0 : i32
    return %arg0, %arg1, %c0_i32, %c0_i32_0, %c0_i32_1 : i32, i32, i32, i32, i32
  }
  func.func @transform_2(%arg0: i32, %arg1: i32, %arg2: memref<4xf32, #tpu.memory_space<smem>>) -> (i32, i32, i32, i32) {
    %c0_i32 = arith.constant 0 : i32
    %c0_i32_0 = arith.constant 0 : i32
    %c0_i32_1 = arith.constant 0 : i32
    %c0_i32_2 = arith.constant 0 : i32
    %c0_i32_3 = arith.constant 0 : i32
    return %c0_i32, %c0_i32_0, %c0_i32_1, %c0_i32_2 : i32, i32, i32, i32
  }
  func.func @transform_3(%arg0: i32, %arg1: i32, %arg2: memref<4xf32, #tpu.memory_space<smem>>) -> (i32, i32, i32) {
    %c0_i32 = arith.constant 0 : i32
    %c0_i32_0 = arith.constant 0 : i32
    %c0_i32_1 = arith.constant 0 : i32
    return %arg1, %c0_i32, %c0_i32_0 : i32, i32, i32
  }
  func.func @transform_4(%arg0: i32, %arg1: i32, %arg2: memref<4xf32, #tpu.memory_space<smem>>) -> (i32, i32, i32, i32) {
    %c0_i32 = arith.constant 0 : i32
    %c0_i32_0 = arith.constant 0 : i32
    %c0_i32_1 = arith.constant 0 : i32
    return %arg0, %arg1, %c0_i32, %c0_i32_0 : i32, i32, i32, i32
  }
}

</mosaic_0001>

<bundles_post_ra>
// kernel: mixed_op_down.1
= control target key start
LH: loop header
LB: loop body
LE: loop exit
PB: predicated region body
PF: predicated region fallthrough
CT: control target
= control target key end

     0   :  { %s1602_s0 = inlined_call_operand.vmem [shape: f32[4], index: 0, kind: input, shape index: {}]   ;;  %s1603_s1 = inlined_call_operand.vmem [shape: f32[2,1,3,4,136], index: 1, kind: input, shape index: {}]   ;;  %s1604_s2 = inlined_call_operand.vmem [shape: f32[2,1,3,4,128], index: 2, kind: input, shape index: {}]   ;;  %s1605_s3 = inlined_call_operand.vmem [shape: f32[3,3,4,4], index: 3, kind: input, shape index: {}]   ;;  %s1606_s4 = inlined_call_operand.vmem [shape: f32[1,3,128], index: 4, kind: input, shape index: {}]   ;;  %s1607_s5 = inlined_call_operand.vmem [shape: f32[2,1,4,128], index: 5, kind: output, shape index: {}]  }
   0x1   :  { %s10_s20 = sshll.u32 %s1602_s0, 4  ;;  %s11_s20 = int_to_ptr.vmem [resolvable:$true] %s10_s20 }
   0x2   :  { %s1349_s21 = scalar_lea.vmem %s11_s20, 16  ;;  %p1354_p1 = scmp.lt.s32.totalorder %s11_s20, %s11_s20 }
   0x3   :  { %p1350_p0 = scmp.ne.s32.totalorder %s11_s20, %s1349_s21  ;;  %p1355_p2 = scmp.lt.s32.totalorder %s1349_s21, %s1349_s21 }
   0x5   :  { %p1356_p3 = por %p1355_p2, %p1354_p1 }
   0x7   :  { %p1357_p4 = pnand %p1356_p3, %p1350_p0 }
   0x9   :  { %1360 = shalt.err (!%p1357_p4)  }
   0xa   :  { %s1387_s22 = smov [#allocation3]  }
   0xb   :  { %13 = dma.vmem_to_smem %s11_s20, 16, %s1387_s22, [#allocation2] }
   0xc   :  { %1373 = dma.done.wait [#allocation2], 16 }
   0xd   :  { %1374 = vsyncadd [#allocation2], 4294967280 }
   0xe   :  { %15 = sfence }
   0xf   :  { %s1425_s23 = smov 0   ;;  %s1427_s24 = smov 0  }
  0x10   :  { %s1429_s25 = smov 0  }
  0x11 LB: > { %s33_s0 = sadd.s32 1, %s1381_s24  ;;  %p1212_p5 = scmp.ge.s32.totalorder %s1385_s25, 1  ;;  %s1385_s25 = sphi %s1429_s25, %s21_s25   ;;  %s1381_s24 = sphi %s1427_s24, %s1609_s24   ;;  %s1377_s23 = sphi %s1425_s23, %s1608_s23  }
  0x12   : > { %p35_p6 = scmp.ge.s32.totalorder %s33_s0, 2  ;;  %p214_p7 = scmp.lt.s32.totalorder %s1385_s25, 3 }
  0x14   : > { %s1611_s0 = smov (%p35_p6, %s33_s0), 0  ;;  %p215_p8 = pnand %p1212_p5, %p214_p7 }
  0x15   : > { %p259_p9 = scmp.lt.s32.totalorder (!%p215_p8), %s1377_s23, 1  ;;  %v1388_v0 = vmov (!%p215_p8), 0.0   ;;  %vm1389_vm0 = vmmov (!%p215_p8), 0   ;;  %v1218_v1 = vld [vmem:[%s1606_s4 + $0x2] ss:$0 sm:$0xff] (!%p215_p8)  ;;  %vm311_vm1 = vcmask (!%p215_p8), 1043456  }
  0x16   : > { %218 = sbr.rel (%p215_p8) target bundleno = 386 (0x182), region = 36  ;;  %1270 = vmatprep.subr.mxu0 (!%p215_p8), %v1388_v0  ;;  %1272 = vmatprep.mubr.msk.f32.mxu0 (!%p215_p8), %vm1389_vm0, %v1388_v0  ;;  %v1219_v4 = vld [vmem:[%s1605_s3 + $0xc] sm:$0xf] (!%p215_p8)  ;;  %vm307_vm2 = vcmask (!%p215_p8), 31744   ;;  %s1390_s13 = smov (!%p215_p8), 120   ;;  %vm471_vm3 = vcmask (!%p215_p8), 982016  }
  0x17   : > { %1275 = vmatprep.subr.mxu1 (!%p215_p8), %v1388_v0  ;;  %1277 = vmatprep.mubr.msk.f32.mxu1 (!%p215_p8), %vm1389_vm0, %v1388_v0  ;;  %v294_v8 = vld [vmem:[%s1605_s3] sm:$0xf] (!%p215_p8)  ;;  %v1229_v12 = vld [vmem:[%s1605_s3 + $0x4] sm:$0xf] (!%p215_p8)  ;;  %s1391_s18 = smov (!%p215_p8), 8   ;;  %vm557_vm4 = vcmask (!%p215_p8), 64512  }
  0x18   : > { %v1517_v13 = vld [vmem:[%s1606_s4 + $0x1] ss:$0 sm:$0xff] (!%p215_p8)  ;;  %v1224_v24 = vld [vmem:[%s1605_s3 + $0x18] sm:$0xf] (!%p215_p8)  ;;  %v1235_v31 = vld [vmem:[%s1605_s3 + $0x1c] sm:$0xf] (!%p215_p8) }
  0x19   : > { %v1232_v35 = vld [vmem:[%s1605_s3 + $0x10] sm:$0xf] (!%p215_p8)  ;;  %v1243_v40 = vld [vmem:[%s1605_s3 + $0x14] sm:$0xf] (!%p215_p8)  ;;  %v1240_v43 = vld [vmem:[%s1605_s3 + $0x8] sm:$0xf] (!%p215_p8) }
  0x1a   : > { %v1246_v51 = vld [vmem:[%s1605_s3 + $0x20] sm:$0xf] (!%p215_p8)  ;;  %s1216_s11 = sld [smem:[#allocation3 + $0x1]] (!%p215_p8) }
  0x1d   : > { %s1613_s23 = smov (!%p259_p9, %s1377_s23), 1 }
  0x1e   : > { %s1315_s26 = smul.u32 24, %s1613_s23  ;;  %s1215_s14 = sshll.u32 %s1613_s23, 2 }
  0x1f   : > { %s1316_s27 = smul.u32 12, %s1613_s23  ;;  %s287_s17 = scalar_lea.vmem %s1607_s5, %s1215_s14 }
  0x20   : > { %s267_s30 = scalar_lea.vmem %s1603_s1, %s1315_s26 }
  0x21   : > { %v1459_v2 = vld [vmem:[%s267_s30] sm:$0xff]  ;;  %v1461_v3 = vld [vmem:[%s267_s30 + $0x8] sm:$0xff]  ;;  %s1466_s10 = scalar_lea.vmem %s1604_s2, %s1316_s27  ;;  %v1489_v10 = vld [vmem:[%s267_s30 + $0x10] sm:$0xff] }
  0x22   : > { %467 = vrot.lane.b32.xlu0 %v1459_v2, %s1390_s13  ;;  %738 = vrot.lane.b32.xlu1 %v1461_v3, %s1390_s13  ;;  %v466_v5 = vcombine.high %v1459_v2, %v1459_v2  ;;  %v737_v6 = vcombine.high %v1461_v3, %v1461_v3  ;;  %v293_v7 = vld [vmem:[%s1466_s10] sm:$0xf]  ;;  %v993_v11 = vcombine.high %v1489_v10, %v1489_v10  ;;  %v1228_v26 = vld [vmem:[%s1466_s10 + $0x4] sm:$0xf] }
  0x23   : > { %1271 = vmatpush3.msk.msra.mxu0 %vm311_vm1, %v293_v7  ;;  %v1484_v9 = vadd.f32 %v1218_v1, %v293_v7  ;;  %1276 = vmatpush3.msk.msra.mxu1 %vm311_vm1, %v1459_v2  ;;  %v299_v14 = vadd.f32 %v1517_v13, %v1459_v2  ;;  %v461_v17 = vadd.f32 %v293_v7, %v1459_v2  ;;  %v1239_v32 = vld [vmem:[%s1466_s10 + $0x8] sm:$0xf] }
  0x24   : > { %1273 = vmatmul.mubr.msk.f32.vlgmr.msra.gmra.mrb[0].mxu0 %vm307_vm2, %v1219_v4  ;;  %1278 = vmatmul.mubr.msk.f32.vlgmr.msra.gmra.mrb[0].mxu1 %vm307_vm2, %v294_v8  ;;  %v652_v61 = vadd.f32 %v1461_v3, %v1517_v13 }
  0x25   : > { %1280 = vmatprep.subr.mxu0 %v1388_v0  ;;  %1285 = vmatprep.subr.mxu1 %v1388_v0  ;;  %v1521_v15 = vadd.f32 %v1218_v1, %v299_v14 }
  0x26   : > { %469 = vrot.lane.b32.xlu0 %v466_v5, %s1390_s13  ;;  %740 = vrot.lane.b32.xlu1 %v737_v6, %s1390_s13 }
  0x27   : > { %1282 = vmatprep.mubr.msk.f32.mxu0 %vm1389_vm0, %v1388_v0  ;;  %1286 = vmatpush3.msk.msra.mxu1 %vm311_vm1, %v1461_v3  ;;  %v463_v25 = vmax.f32 %v1521_v15, %v1484_v9 }
  0x28   : > { %1287 = vmatprep.mubr.msk.f32.mxu1 %vm1389_vm0, %v1388_v0  ;;  %1295 = vmatprep.subr.mxu1 %v1388_v0 }
  0x29   : > { %1288 = vmatmul.mubr.msk.f32.vlgmr.msra.gmra.mrb[2].mxu1 %vm307_vm2, %v1229_v12 }
  0x2a   : > { %994 = vrot.lane.b32.xlu0 %v1489_v10, %s1390_s13  ;;  %996 = vrot.lane.b32.xlu1 %v993_v11, %s1390_s13 }
  0x2b   : > { %1297 = vmatprep.mubr.msk.f32.mxu1 %vm1389_vm0, %v1388_v0 }
  0x2e   : > { %554 = vrot.lane.b32.xlu0 %v1218_v1, %s1391_s18  ;;  %v908_v1 = vadd.f32 %v1489_v10, %v1517_v13 }
  0x94   : > { %v468_v16 = vpop.permute.xlu0 %467  ;;  %v739_v18 = vpop.permute.xlu1 %738 }
  0x95   : > { %v549_v19 = vrot.slane %v468_v16, 4  ;;  %v819_v27 = vrot.slane %v739_v18, 4 }
  0x97   : > { %v550_v20 = vsel %vm471_vm3, %v468_v16, %v549_v19  ;;  %v820_v36 = vsel %vm471_vm3, %v739_v18, %v819_v27 }
  0x98   : > { %v552_v21 = vadd.f32 %v550_v20, %v461_v17  ;;  %v470_v22 = vpop.permute.xlu0 %469  ;;  %v741_v23 = vpop.permute.xlu1 %740 }
  0x99   : > { %v472_v28 = vsel %vm471_vm3, %v468_v16, %v470_v22  ;;  %v742_v29 = vsel %vm471_vm3, %v739_v18, %v741_v23  ;;  %v1080_v22 = vstv %s1216_s11 }
  0x9a   : > { %v651_v30 = vadd.f32 %v1461_v3, %v552_v21  ;;  %1281 = vmatpush3.msk.msra.mxu0 %vm311_vm1, %v472_v28  ;;  %1296 = vmatpush3.msk.msra.mxu1 %vm311_vm1, %v742_v29 }
  0x9b   : > { %1283 = vmatmul.mubr.msk.f32.vlgmr.msra.gmra.mrb[2].mxu0 %vm307_vm2, %v1224_v24  ;;  %1290 = vmatprep.subr.mxu0 %v1388_v0  ;;  %v1249_v24 = vld [vmem:[%s1606_s4] ss:$0 sm:$0xff] }
  0x9c   : > { %v733_v33 = vadd.f32 %v1228_v26, %v651_v30  ;;  %v995_v34 = vpop.permute.xlu0 %994  ;;  %1291 = vmatpush3.msk.msra.mxu0 %vm311_vm1, %v1228_v26  ;;  %1292 = vmatprep.mubr.msk.f32.mxu0 %vm1389_vm0, %v1388_v0  ;;  %v997_v39 = vpop.permute.xlu1 %996 }
  0x9d   : > { %v1075_v37 = vrot.slane %v995_v34, 4  ;;  %1298 = vmatmul.mubr.msk.f32.vlgmr.msra.gmra.mrb[4].mxu1 %vm307_vm2, %v1235_v31  ;;  %1300 = vmatprep.subr.mxu0 %v1388_v0  ;;  %v998_v46 = vsel %vm471_vm3, %v995_v34, %v997_v39 }
  0x9e   : > { %v822_v38 = vadd.f32 %v820_v36, %v733_v33  ;;  %1305 = vmatprep.subr.mxu1 %v1388_v0  ;;  %1307 = vmatprep.mubr.msk.f32.mxu1 %vm1389_vm0, %v1388_v0 }
  0x9f   : > { %1293 = vmatmul.mubr.msk.f32.vlgmr.msra.gmra.mrb[4].mxu0 %vm307_vm2, %v1232_v35  ;;  %1306 = vmatpush3.msk.msra.mxu1 %vm311_vm1, %v1239_v32  ;;  %v1076_v44 = vsel %vm471_vm3, %v995_v34, %v1075_v37 }
  0xa0   : > { %v907_v41 = vadd.f32 %v1489_v10, %v822_v38  ;;  %v555_v42 = vpop.permute.xlu0 %554  ;;  %1301 = vmatpush3.msk.msra.mxu0 %vm311_vm1, %v1489_v10  ;;  %1302 = vmatprep.mubr.msk.f32.mxu0 %vm1389_vm0, %v1388_v0 }
  0xa1   : > { %v556_v45 = vrot.slane %v555_v42, 4  ;;  %1308 = vmatmul.mubr.msk.f32.vlgmr.msra.gmra.mrb[6].mxu1 %vm307_vm2, %v1243_v40  ;;  %1310 = vmatprep.subr.mxu0 %v1388_v0 }
  0xa2   : > { %v989_v47 = vadd.f32 %v1239_v32, %v907_v41 }
  0xa3   : > { %v558_v48 = vsel %vm557_vm4, %v556_v45, %v555_v42  ;;  %1303 = vmatmul.mubr.msk.f32.vlgmr.msra.gmra.mrb[6].mxu0 %vm307_vm2, %v1240_v43 }
  0xa4   : > { %v1078_v49 = vadd.f32 %v1076_v44, %v989_v47  ;;  %v560_v50 = vadd.f32 %v558_v48, %v1459_v2  ;;  %1311 = vmatpush3.msk.msra.mxu0 %vm311_vm1, %v998_v46  ;;  %1312 = vmatprep.mubr.msk.f32.mxu0 %vm1389_vm0, %v1388_v0 }
  0xa6   : > { %562 = vrot.lane.b32.xlu1 %v560_v50, %s1390_s13  ;;  %v1087_v30 = vmul.f32 %v1249_v24, %v1078_v49 }
  0xa7   : > { %1313 = vmatmul.mubr.msk.f32.vlgmr.msra.gmra.mrb[8].mxu0 %vm307_vm2, %v1246_v51 }
  0xf7   : > { %v381_v52 = vpop.f32.mrb[0].mxu0  ;;  %v457_v53 = vpop.f32.mrb[0].mxu1 }
  0xf8   : > { %v1274_v54 = vpop.f32.mrb[1].mxu0  ;;  %v458_v55 = vadd.f32 %v457_v53, %v381_v52  ;;  %v1279_v56 = vpop.f32.mrb[1].mxu1 }
  0xfc   : > { %v646_v57 = vpop.f32.mrb[2].mxu1 }
  0xfd   : > { %v1289_v58 = vpop.f32.mrb[3].mxu1 }
 0x118   : > { %v563_v59 = vpop.permute.xlu1 %562 }
 0x119   : > { %v564_v60 = vrot.slane %v563_v59, 4 }
 0x11b   : > { %v565_v62 = vsel %vm471_vm3, %v563_v59, %v564_v60 }
 0x11c   : > { %v567_v63 = vmax.f32 %v463_v25, %v565_v62 }
 0x11e   : > { %v653_v0 = vmax.f32 %v567_v63, %v652_v61 }
 0x120   : > { %v734_v2 = vmax.f32 %v653_v0, %v1228_v26 }
 0x122   : > { %v823_v4 = vmax.f32 %v734_v2, %v820_v36 }
 0x124   : > { %v909_v5 = vmax.f32 %v823_v4, %v908_v1 }
 0x126   : > { %v990_v6 = vmax.f32 %v909_v5, %v1239_v32 }
 0x128   : > { %v1079_v7 = vmax.f32 %v990_v6, %v1076_v44 }
 0x12a   : > { %v1081_v27 = vmul.f32 %v1080_v22, %v1079_v7 }
 0x16e   : > { %v544_v8 = vpop.f32.mrb[2].mxu0 }
 0x16f   : > { %v548_v9 = vadd.f32 %v544_v8, %v458_v55  ;;  %v1284_v11 = vpop.f32.mrb[3].mxu0 }
 0x170   : > { %v814_v12 = vpop.f32.mrb[4].mxu1 }
 0x171   : > { %v650_v14 = vadd.f32 %v646_v57, %v548_v9  ;;  %v1299_v3 = vpop.f32.mrb[5].mxu1 }
 0x172   : > { %v728_v15 = vpop.f32.mrb[4].mxu0 }
 0x173   : > { %v732_v16 = vadd.f32 %v728_v15, %v650_v14  ;;  %v1294_v17 = vpop.f32.mrb[5].mxu0 }
 0x174   : > { %v984_v18 = vpop.f32.mrb[6].mxu1 }
 0x175   : > { %v818_v19 = vadd.f32 %v814_v12, %v732_v16  ;;  %v1309_v20 = vpop.f32.mrb[7].mxu1 }
 0x176   : > { %v902_v10 = vpop.f32.mrb[6].mxu0 }
 0x177   : > { %v906_v13 = vadd.f32 %v902_v10, %v818_v19  ;;  %v1304_v21 = vpop.f32.mrb[7].mxu0 }
 0x179   : > { %v988_v23 = vadd.f32 %v984_v18, %v906_v13 }
 0x17a   : > { %v1070_v25 = vpop.f32.mrb[8].mxu0 }
 0x17b   : > { %v1074_v26 = vadd.f32 %v1070_v25, %v988_v23  ;;  %v1314_v28 = vpop.f32.mrb[9].mxu0 }
 0x17d   : > { %v1082_v29 = vadd.f32 %v1081_v27, %v1074_v26 }
 0x17f   : > { %v1088_v31 = vadd.f32 %v1087_v30, %v1082_v29 }
 0x181   : > { %1089 = vst [vmem:[%s287_s17] sm:$0xf] %v1088_v31 }
 0x182 PF: > { %s21_s25 = sadd.s32 1, %s1385_s25   ;;  %s1608_s23 = smov %s1381_s24 }
 0x183   : > { %p18_p10 = scmp.ge.s32.totalorder %s21_s25, 4   ;;  %s1609_s24 = smov %s1611_s0 }
 0x185   :  { %20 = sbr.rel (!%p18_p10) target bundleno = 17 (0x11), region = 84 }

</bundles_post_ra>
